<compile_context>
chip_gen: v7x
topology: tpu7x:2x2x1
jax: 0.10.0
libtpu: 0.0.40
codegen_flags: <defaults>
</compile_context>

<pallas_src>
import jax
import jax.numpy as jnp
from jax.experimental import pallas as pl
from jax.experimental.pallas import tpu as pltpu


def _scale_kernel(w_ref, x_ref, o_ref):
    # out = W * x, computed in the (promoted) output dtype.
    o_ref[...] = x_ref[...].astype(o_ref.dtype) * w_ref[...].astype(o_ref.dtype)


def _vmem_capacity_bytes():
    """Physical per-core VMEM (128 MiB v5e/v6e, 64 MiB v7x); conservative fallback."""
    try:
        info = pltpu.get_tpu_info()
        cap = int(getattr(info, "vmem_capacity_bytes", 0))
        if cap > 0:
            return cap
    except Exception:
        pass
    return 64 << 20  # conservative: smallest current generation (v7x per-TC)


def network_forward(x, w, *, donate_x=False):
    """Pallas implementation of Network.forward: out = W * x (broadcast over last dim)."""
    emb_dim = int(w.shape[0])
    assert x.shape[-1] == emb_dim, "last dim of x must equal emb_dim"

    orig_shape = x.shape
    out_dtype = jnp.promote_types(x.dtype, w.dtype)  # match torch's W * x promotion

    rows = 1
    for d in orig_shape[:-1]:
        rows *= int(d)
    rows = max(int(rows), 1)

    x2d = x.reshape(rows, emb_dim)
    w2d = w.reshape(1, emb_dim)

    # Lane density: keep the last (lane) dim a multiple of 128 so output stores are
    # unmasked vst. Only pads when emb_dim isn't already 128-aligned.
    lane = 128
    emb_pad = (-emb_dim) % lane
    emb_p = emb_dim + emb_pad
    if emb_pad:
        x2d = jnp.pad(x2d, ((0, 0), (0, emb_pad)))
        w2d = jnp.pad(w2d, ((0, 0), (0, emb_pad)))

    x_item = jnp.dtype(x.dtype).itemsize
    o_item = jnp.dtype(out_dtype).itemsize
    w_item = jnp.dtype(w.dtype).itemsize

    # Dtype sublane minimum: 8 rows (f32) / 16 (bf16) / 32 (int8).
    sublane = max(8, 32 // min(x_item, o_item))

    # ---- VMEM-budget-driven tile sizing (generation aware). ----
    vmem_cap = _vmem_capacity_bytes()
    footprint_budget = min(vmem_cap // 2, 32 << 20)   # double-buffered x+out budget
    per_elem = x_item + o_item                        # bytes per block element (x + out)
    block_elems = max(footprint_budget // (2 * per_elem), sublane * lane)

    if sublane * emb_p <= block_elems:
        # Row-only tiling: full lane width per block (common case).
        emb_chunk = emb_p
        row_tile = (block_elems // emb_p) // sublane * sublane
        row_tile = max(sublane, row_tile)
        if row_tile >= rows:
            row_tile = rows          # full-extent block is always legal
    else:
        # emb_dim too wide for one sublane slab under the budget: tile lanes too.
        row_tile = rows if rows < sublane else sublane
        emb_chunk = (block_elems // max(row_tile, 1)) // lane * lane
        emb_chunk = max(lane, min(emb_chunk, emb_p))

    grid = (pl.cdiv(rows, row_tile), pl.cdiv(emb_p, emb_chunk))

    # Scoped VMEM limit: actual double-buffered footprint + slack (never exceeds physical).
    block_bytes = row_tile * emb_chunk * per_elem + emb_chunk * w_item
    vmem_limit = int(min(vmem_cap, max(2 * block_bytes + (4 << 20), 16 << 20)))

    aliases = {}
    if donate_x and not emb_pad and x.dtype == out_dtype:
        aliases = {1: 0}  # reuse x's HBM buffer for the output (halves HBM allocation)

    out = pl.pallas_call(
        _scale_kernel,
        out_shape=jax.ShapeDtypeStruct((rows, emb_p), out_dtype),
        grid_spec=pltpu.PrefetchScalarGridSpec(
            num_scalar_prefetch=0,
            grid=grid,
            in_specs=[
                pl.BlockSpec((1, emb_chunk), lambda i, j: (0, j)),          # W (broadcast)
                pl.BlockSpec((row_tile, emb_chunk), lambda i, j: (i, j)),   # x tile
            ],
            out_specs=pl.BlockSpec((row_tile, emb_chunk), lambda i, j: (i, j)),
        ),
        compiler_params=pltpu.CompilerParams(
            dimension_semantics=("parallel", "parallel"),  # v7x: shard grid across both TCs
            vmem_limit_bytes=vmem_limit,
        ),
        input_output_aliases=aliases,
    )(w2d, x2d)

    if emb_pad:
        out = out[:, :emb_dim]
    return out.reshape(orig_shape)


if __name__ == "__main__":
    key = jax.random.PRNGKey(0)
    k1, k2, k3, k4, k5 = jax.random.split(key, 5)

    emb_dim = 384

    # 1) Module demo shape (tiny -> single-block grid), W = ones like nn.Parameter(torch.ones).
    x_small = jax.random.normal(k1, (2, 8, emb_dim), dtype=jnp.float32)
    W_ones = jnp.ones((emb_dim,), dtype=jnp.float32)
    out_small = jax.block_until_ready(network_forward(x_small, W_ones))
    assert out_small.shape == x_small.shape and out_small.dtype == x_small.dtype
    assert jnp.allclose(out_small, W_ones * x_small, atol=1e-6), "small-path mismatch"

    # 2) Larger input: multi-step row grid with a ragged last block, non-trivial W.
    x_big = jax.random.normal(k2, (32, 512, emb_dim), dtype=jnp.float32)
    W_rand = jax.random.normal(k3, (emb_dim,), dtype=jnp.float32)
    out_big = jax.block_until_ready(network_forward(x_big, W_rand))
    assert jnp.allclose(out_big, W_rand * x_big, atol=1e-6), "tiled-path mismatch"

    # 3) Mixed precision: bf16 activations * f32 W promotes to f32 (torch semantics).
    x_bf16 = jax.random.normal(k4, (2, 8, emb_dim), dtype=jnp.bfloat16)
    out_mixed = jax.block_until_ready(network_forward(x_bf16, W_rand))
    assert out_mixed.dtype == jnp.float32
    assert jnp.allclose(out_mixed, W_rand * x_bf16, atol=1e-6), "promotion mismatch"

    # 4) Non-128-multiple emb_dim exercises the lane-padding branch.
    x_odd = jax.random.normal(k5, (2, 8, 100), dtype=jnp.float32)
    W_odd = jnp.ones((100,), dtype=jnp.float32)
    out_odd = jax.block_until_ready(network_forward(x_odd, W_odd))
    assert jnp.allclose(out_odd, W_odd * x_odd, atol=1e-6), "padded-path mismatch"

    print("KERNEL_OK")
</pallas_src>

<mosaic_0001>
module attributes {stable_mosaic.version = 11 : i64} {
  func.func @_scale_kernel(%arg0: i32, %arg1: i32, %arg2: memref<1x384xf32, #tpu.memory_space<vmem>>, %arg3: memref<16x384xf32, #tpu.memory_space<vmem>>, %arg4: memref<16x384xf32, #tpu.memory_space<vmem>>) attributes {dimension_semantics = [#tpu.dimension_semantics<parallel>, #tpu.dimension_semantics<parallel>], iteration_bounds = array<i64: 1, 1>, scalar_prefetch = 0 : i64, scratch_operands = 0 : i64, tpu.core_type = #tpu.core_type<tc>, window_params = [{transform_indices = @transform_0, window_bounds = array<i64: 1, 384>}, {transform_indices = @transform_1, window_bounds = array<i64: 16, 384>}, {transform_indices = @transform_2, window_bounds = array<i64: 16, 384>}]} {
    %c0 = arith.constant 0 : index
    %c0_0 = arith.constant 0 : index
    %0 = vector.load %arg3[%c0, %c0_0] : memref<16x384xf32, #tpu.memory_space<vmem>>, vector<16x384xf32>
    %c0_1 = arith.constant 0 : index
    %c0_2 = arith.constant 0 : index
    %1 = vector.load %arg2[%c0_1, %c0_2] : memref<1x384xf32, #tpu.memory_space<vmem>>, vector<1x384xf32>
    %2 = vector.broadcast %1 : vector<1x384xf32> to vector<16x384xf32>
    %3 = arith.mulf %0, %2 : vector<16x384xf32>
    %c0_3 = arith.constant 0 : index
    %c0_4 = arith.constant 0 : index
    %4 = vector.load %arg4[%c0_3, %c0_4] : memref<16x384xf32, #tpu.memory_space<vmem>>, vector<16x384xf32>
    tpu.vector_store %arg4[%c0_3, %c0_4], %3 {strides = array<i32>} : memref<16x384xf32, #tpu.memory_space<vmem>>, vector<16x384xf32>,
    return
  }
  func.func @transform_0(%arg0: i32, %arg1: i32) -> (i32, i32) {
    %c0_i32 = arith.constant 0 : i32
    %c0_i32_0 = arith.constant 0 : i32
    return %c0_i32, %arg1 : i32, i32
  }
  func.func @transform_1(%arg0: i32, %arg1: i32) -> (i32, i32) {
    %c0_i32 = arith.constant 0 : i32
    return %arg0, %arg1 : i32, i32
  }
  func.func @transform_2(%arg0: i32, %arg1: i32) -> (i32, i32) {
    %c0_i32 = arith.constant 0 : i32
    return %arg0, %arg1 : i32, i32
  }
}

</mosaic_0001>

<bundles_post_ra>
// kernel: tpu_custom_call.1
= control target key start
LH: loop header
LB: loop body
LE: loop exit
PB: predicated region body
PF: predicated region fallthrough
CT: control target
= control target key end

     0   :  { %7 = vsyncpa [#allocation3], 0  ;;  %s237_s0 = inlined_call_operand.hbm [shape: f32[1,384], index: 0, kind: input, shape index: {}]   ;;  %s238_s1 = inlined_call_operand.hbm [shape: f32[16,384], index: 1, kind: input, shape index: {}]   ;;  %s239_s2 = inlined_call_operand.hbm [shape: f32[16,384], index: 2, kind: output, shape index: {}]  }
   0x1   :  { %8 = vsyncpa [#allocation6], 0 }
   0x2   :  { %9 = vsyncpa [#allocation4], 0  ;;  %s168_s9 = smov [#allocation2]   ;;  %s169_s11 = smov [#allocation5]  }
   0x3   :  { %s16_s10 = sshll.u32 %s168_s9, 4  ;;  %s25_s12 = sshll.u32 %s169_s11, 4  ;;  %s17_s10 = int_to_ptr.vmem [resolvable:$true] %s16_s10  ;;  %s188_s12 = int_to_ptr.vmem [resolvable:$true] %s25_s12 }
   0x4   :  { %s96_s15 = scalar_lea.hbm %s237_s0, 48 }
   0x5   :  { %p97_p0 = scmp.ne.s32.totalorder %s237_s0, %s96_s15  ;;  %p100_p1 = scmp.lt.u32.totalorder %s96_s15, %s237_s0 }
   0x7   :  { %p102_p2 = pnand %p100_p1, %p97_p0 }
   0x9   :  { %105 = shalt.err (!%p102_p2)
}
   0xa   :  { %s106_s20 = scalar_lea.vmem %s17_s10, 48  ;;  %s110_s21 = scalar_lea.vmem %s17_s10, 64 }
   0xb   :  { %p107_p3 = scmp.ne.s32.totalorder %s17_s10, %s106_s20  ;;  %p111_p4 = scmp.lt.s32.totalorder %s17_s10, %s17_s10 }
   0xc   :  { %p112_p5 = scmp.lt.s32.totalorder %s110_s21, %s106_s20 }
   0xe   :  { %p113_p6 = por %p112_p5, %p111_p4 }
  0x10   :  { %p114_p7 = pnand %p113_p6, %p107_p3 }
  0x12   :  { %117 = shalt.err (!%p114_p7)
}
  0x13   :  { %19 = dma.hbm_to_vmem [thread:$0]  %s237_s0, 48, %s17_s10, [#allocation3]  }
  0x14   :  { %s118_s26 = scalar_lea.hbm %s238_s1, 768 }
  0x15   :  { %p119_p8 = scmp.ne.s32.totalorder %s238_s1, %s118_s26  ;;  %p122_p9 = scmp.lt.u32.totalorder %s118_s26, %s238_s1 }
  0x17   :  { %p124_p10 = pnand %p122_p9, %p119_p8 }
  0x19   :  { %127 = shalt.err (!%p124_p10)
}
  0x1a   :  { %s128_s3 = scalar_lea.vmem %s188_s12, 768  ;;  %p133_p12 = scmp.lt.s32.totalorder %s188_s12, %s188_s12 }
  0x1b   :  { %p129_p11 = scmp.ne.s32.totalorder %s188_s12, %s128_s3  ;;  %p134_p13 = scmp.lt.s32.totalorder %s128_s3, %s128_s3 }
  0x1d   :  { %p135_p0 = por %p134_p13, %p133_p12 }
  0x1f   :  { %p136_p1 = pnand %p135_p0, %p129_p11 }
  0x21   :  { %139 = shalt.err (!%p136_p1)
}
  0x22   :  { %s170_s0 = smov 384   ;;  %s171_s4 = smov 24  }
  0x23   :  { %31 = dma.hbm_to_vmem [thread:$0]  %s238_s1, 768, %s188_s12, [#allocation6], %s170_s0, %s170_s0, %s171_s4  }
  0x24   :  { %162 = dma.done.wait [#allocation3], 48  }
  0x25   :  { %163 = vsyncadd [#allocation3], 4294967248 }
  0x26   :  { %164 = dma.done.wait [#allocation6], 768  }
  0x27   :  { %165 = vsyncadd [#allocation6], 4294966528  ;;  %v46_v0 = vlaneseq  ;;  %v38_v5 = vld [vmem:[#allocation5] sm:$0xff]  ;;  %v44_v6 = vld [vmem:[#allocation2] sm:$0x7]  ;;  %s172_s7 = smov [#allocation7]  }
  0x28   :  { %v39_v7 = vld [vmem:[#allocation5 + $0x8] sm:$0xff]  ;;  %v40_v10 = vld [vmem:[#allocation5 + $0x10] sm:$0xff]  ;;  %v41_v12 = vld [vmem:[#allocation5 + $0x18] sm:$0xff]  ;;  %s78_s1 = sshll.u32 %s172_s7, 4  ;;  %s79_s1 = int_to_ptr.vmem [resolvable:$true] %s78_s1 }
  0x29   :  { %v47_v1 = vshrl.u32 %v46_v0, 7  ;;  %v42_v13 = vld [vmem:[#allocation5 + $0x20] sm:$0xff]  ;;  %v43_v14 = vld [vmem:[#allocation5 + $0x28] sm:$0xff]  ;;  %s140_s8 = scalar_lea.vmem %s79_s1, 768  ;;  %p145_p3 = scmp.lt.s32.totalorder %s79_s1, %s79_s1 }
  0x2a   :  { %p141_p2 = scmp.ne.s32.totalorder %s79_s1, %s140_s8  ;;  %p146_p4 = scmp.lt.s32.totalorder %s140_s8, %s140_s8 }
  0x2b   :  { %v48_v2 = vsub.s32 0, %v47_v1  ;;  %v52_v3 = vsub.s32 1, %v47_v1  ;;  %v56_v4 = vsub.s32 2, %v47_v1 }
  0x2c   :  { %p147_p5 = por %p146_p4, %p145_p3 }
  0x2d   :  { %v49_v8 = vrot.slane %v44_v6, %v48_v2  ;;  %v53_v9 = vrot.slane %v44_v6, %v52_v3  ;;  %v57_v11 = vrot.slane %v44_v6, %v56_v4 }
  0x2e   :  { %p148_p6 = pnand %p147_p5, %p141_p2 }
  0x2f   :  { %v61_v15 = vmul.f32 %v49_v8, %v38_v5  ;;  %v62_v16 = vmul.f32 %v53_v9, %v39_v7  ;;  %v63_v17 = vmul.f32 %v57_v11, %v40_v10  ;;  %v64_v18 = vmul.f32 %v49_v8, %v41_v12 }
  0x30   :  { %v65_v19 = vmul.f32 %v53_v9, %v42_v13  ;;  %v66_v20 = vmul.f32 %v57_v11, %v43_v14 }
  0x31   :  { %67 = vst [vmem:[#allocation7] sm:$0xff] %v61_v15  ;;  %68 = vst [vmem:[#allocation7 + $0x8] sm:$0xff] %v62_v16 }
  0x32   :  { %69 = vst [vmem:[#allocation7 + $0x10] sm:$0xff] %v63_v17  ;;  %70 = vst [vmem:[#allocation7 + $0x18] sm:$0xff] %v64_v18 }
  0x33   :  { %71 = vst [vmem:[#allocation7 + $0x20] sm:$0xff] %v65_v19  ;;  %72 = vst [vmem:[#allocation7 + $0x28] sm:$0xff] %v66_v20 }
  0x34   :  { %151 = shalt.err (!%p148_p6)
}
  0x35   :  { %s152_s11 = scalar_lea.hbm %s239_s2, 768 }
  0x36   :  { %p153_p7 = scmp.ne.s32.totalorder %s239_s2, %s152_s11  ;;  %p156_p8 = scmp.lt.u32.totalorder %s152_s11, %s239_s2 }
  0x38   :  { %p158_p9 = pnand %p156_p8, %p153_p7 }
  0x3a   :  { %161 = shalt.err (!%p158_p9)
}
  0x3b   :  { %84 = dma.vmem_to_hbm [thread:$0]  %s79_s1, 768, %s239_s2, [#allocation4], %s170_s0, %s170_s0, %s171_s4  }
  0x3c   :  { %166 = dma.done.wait [#allocation4], 768  }
  0x3d   :  { %167 = vsyncadd [#allocation4], 4294966528 }
  0x3e   :  { %88 = vsyncpa [#allocation3], 1 }
  0x3f   :  { %89 = vsyncpa [#allocation6], 1 }
  0x40   :  { %90 = vsyncpa [#allocation4], 1 }

</bundles_post_ra>
